<compile_context>
chip_gen: v7x
topology: tpu7x:2x2x1
jax: 0.10.0
libtpu: 0.0.40
codegen_flags: <defaults>
</compile_context>

<pallas_src>
import functools

import jax
import jax.numpy as jnp
from jax.experimental import pallas as pl
from jax.experimental.pallas import tpu as pltpu

_NEG = -1e30  # finite "-inf": padded lanes never produce NaN via 0 * inf


def _round_up(x, m):
    return (x + m - 1) // m * m


def _log_softmax_rows(z):
    """Row-wise log_softmax of an f32 (B, NCp) block; returns (ls, zs, s_max)."""
    s_max = jnp.max(z, axis=1, keepdims=True)
    zs = z - s_max
    ls = zs - jnp.log(jnp.sum(jnp.exp(zs), axis=1, keepdims=True))
    return ls, zs, s_max


def _ce_only_kernel(out_ref, lbl_ref, loss_ref, *, batch):
    """base criterion only: F.cross_entropy(outputs, labels), mean over batch."""
    s_logits = out_ref[...].astype(jnp.float32)
    ls, _, _ = _log_softmax_rows(s_logits)
    iota = jax.lax.broadcasted_iota(jnp.int32, s_logits.shape, 1)
    onehot = (iota == lbl_ref[...]).astype(jnp.float32)
    loss = -jnp.sum(onehot * ls, axis=(0, 1), keepdims=True) * (1.0 / float(batch))
    loss_ref[...] = jnp.broadcast_to(loss, loss_ref.shape)  # lane-dense write


def _distill_kernel(x_ref, wt_ref, bt_ref, out_ref, lbl_ref, loss_ref, acc_ref,
                    *, batch, num_classes_padded, distillation_type, alpha, tau):
    k = pl.program_id(0)
    nk = pl.num_programs(0)

    # ---- teacher matmul: accumulate this K slice on the MXU ------------------
    @pl.when(k == 0)
    def _init():
        acc_ref[...] = jnp.broadcast_to(bt_ref[...], acc_ref.shape)

    acc_ref[...] += jnp.dot(x_ref[...], wt_ref[...],
                            preferred_element_type=jnp.float32)

    # ---- epilogue (softmax / CE / KL) on the last K step ----------------------
    @pl.when(k == nk - 1)
    def _epilogue():
        t_logits = acc_ref[...]                          # (B, NCp) f32; pad cols ~ _NEG
        s_logits = out_ref[...].astype(jnp.float32)      # (B, NCp); pad cols = _NEG

        # One row-max pass serves both log_softmax(outputs) and
        # log_softmax(outputs / T):  max(z/T) == max(z)/T.
        ls, zs, _ = _log_softmax_rows(s_logits)

        iota = jax.lax.broadcasted_iota(jnp.int32, s_logits.shape, 1)
        onehot_lbl = (iota == lbl_ref[...]).astype(jnp.float32)
        inv_b = 1.0 / float(batch)

        # base criterion: F.cross_entropy(outputs, labels)  (mean over batch)
        base_loss = -jnp.sum(onehot_lbl * ls, axis=(0, 1), keepdims=True) * inv_b

        if distillation_type == "soft":
            inv_t = 1.0 / float(tau)
            zs_t = zs * inv_t
            ls_t = zs_t - jnp.log(jnp.sum(jnp.exp(zs_t), axis=1, keepdims=True))
            t_max = jnp.max(t_logits, axis=1, keepdims=True)
            zt_t = (t_logits - t_max) * inv_t
            lt_t = zt_t - jnp.log(jnp.sum(jnp.exp(zt_t), axis=1, keepdims=True))
            p_t = jnp.exp(lt_t)                          # padded cols underflow to 0
            # F.kl_div(log_softmax(s/T), log_softmax(t/T), 'batchmean', log_target=True)
            kl = jnp.sum(p_t * (lt_t - ls_t), axis=(0, 1), keepdims=True) * inv_b
            dist_loss = kl * (float(tau) * float(tau))
        else:  # 'hard'
            t_max = jnp.max(t_logits, axis=1, keepdims=True)
            cand = jnp.where(t_logits == t_max, iota, num_classes_padded)
            t_idx = jnp.min(cand, axis=1, keepdims=True)  # first-max (torch tie-break)
            onehot_t = (iota == t_idx).astype(jnp.float32)
            dist_loss = -jnp.sum(onehot_t * ls, axis=(0, 1), keepdims=True) * inv_b

        a = float(alpha)
        loss = base_loss * (1.0 - a) + dist_loss * a      # (1, 1)
        loss_ref[...] = jnp.broadcast_to(loss, loss_ref.shape)  # lane-dense write


def distillation_loss(inputs, outputs, labels, teacher_w, teacher_b,
                      *, distillation_type="soft", alpha=0.5, tau=2.0, tk=None):
    """inputs: [B,C,H,W]; outputs: [B,NC] student logits; labels: [B] int.

    teacher_w/teacher_b define the deterministic linear teacher classifier
    (stand-in for the PyTorch teacher_model). Inputs / weights are consumed in
    their native dtype (pass bf16 weights for HBM-bandwidth-bound sizes).
    """
    assert distillation_type in ("none", "soft", "hard")
    B = inputs.shape[0]
    NC = outputs.shape[1]

    # -- pad the class axis to a lane multiple --------------------------------
    NCp = _round_up(NC, 128)
    if NCp != NC:
        s_out = jnp.pad(outputs, ((0, 0), (0, NCp - NC)), constant_values=_NEG)
    else:
        s_out = outputs
    lbl = labels.reshape(B, 1).astype(jnp.int32)

    # -- 'none': the module returns base_loss unscaled and never runs the teacher
    if distillation_type == "none":
        out = pl.pallas_call(
            functools.partial(_ce_only_kernel, batch=B),
            out_shape=jax.ShapeDtypeStruct((1, 128), jnp.float32),
            grid=(1,),
            in_specs=[
                pl.BlockSpec((B, NCp), lambda i: (0, 0)),   # student logits
                pl.BlockSpec((B, 1), lambda i: (0, 0)),     # labels
            ],
            out_specs=pl.BlockSpec((1, 128), lambda i: (0, 0)),
        )(s_out, lbl)
        return out[0, 0]

    # -- teacher path: flatten input, pick MXU-aligned K tile ------------------
    D = 1
    for s in inputs.shape[1:]:
        D *= s
    x_flat = inputs.reshape(B, D)                         # row-major, same as torch .view
    if x_flat.dtype != teacher_w.dtype:
        x_flat = x_flat.astype(teacher_w.dtype)           # keep both MXU operands same dtype

    w_itemsize = jnp.dtype(teacher_w.dtype).itemsize
    if tk is None:
        # Cap the double-buffered weight tile at ~12 MiB of VMEM.
        budget = (12 << 20) // max(1, 2 * NCp * w_itemsize)
        tk = max(128, min(2048, (budget // 128) * 128))
    tk = _round_up(min(tk, _round_up(D, 128)), 128)
    D_pad = _round_up(D, tk)
    nk = D_pad // tk

    if D_pad != D:
        x_flat = jnp.pad(x_flat, ((0, 0), (0, D_pad - D)))
        teacher_w = jnp.pad(teacher_w, ((0, D_pad - D), (0, 0)))
    if NCp != NC:
        teacher_w = jnp.pad(teacher_w, ((0, 0), (0, NCp - NC)))
        bt = jnp.pad(teacher_b.reshape(1, NC).astype(jnp.float32),
                     ((0, 0), (0, NCp - NC)), constant_values=_NEG)
    else:
        bt = teacher_b.reshape(1, NC).astype(jnp.float32)

    kernel = functools.partial(
        _distill_kernel,
        batch=B, num_classes_padded=NCp,
        distillation_type=distillation_type, alpha=alpha, tau=tau)

    cost = pl.CostEstimate(
        flops=int(2 * B * D_pad * NCp),
        transcendentals=int(3 * B * NCp),
        bytes_accessed=int(D_pad * NCp * w_itemsize
                           + B * D_pad * jnp.dtype(x_flat.dtype).itemsize
                           + B * NCp * (jnp.dtype(s_out.dtype).itemsize + 4)))

    out = pl.pallas_call(
        kernel,
        out_shape=jax.ShapeDtypeStruct((1, 128), jnp.float32),
        grid=(nk,),
        in_specs=[
            pl.BlockSpec((B, tk), lambda k: (0, k)),      # x slice        [B, tk]
            pl.BlockSpec((tk, NCp), lambda k: (k, 0)),    # teacher_w tile [tk, NCp]
            pl.BlockSpec((1, NCp), lambda k: (0, 0)),     # teacher bias
            pl.BlockSpec((B, NCp), lambda k: (0, 0)),     # student logits
            pl.BlockSpec((B, 1), lambda k: (0, 0)),       # labels
        ],
        out_specs=pl.BlockSpec((1, 128), lambda k: (0, 0)),
        scratch_shapes=[pltpu.VMEM((B, NCp), jnp.float32)],   # teacher-logit accumulator
        compiler_params=pltpu.CompilerParams(
            dimension_semantics=("arbitrary",)),
        cost_estimate=cost,
    )(x_flat, teacher_w, bt, s_out, lbl)
    return out[0, 0]


def _reference(inputs, outputs, labels, teacher_w, teacher_b,
               distillation_type, alpha, tau):
    B = inputs.shape[0]
    ls = jax.nn.log_softmax(outputs, axis=1)
    base = -jnp.mean(ls[jnp.arange(B), labels])
    if distillation_type == "none":
        return base                                  # module returns base_loss unscaled
    t = inputs.reshape(B, -1) @ teacher_w + teacher_b
    if distillation_type == "soft":
        T = tau
        ls_t = jax.nn.log_softmax(outputs / T, axis=1)
        lt_t = jax.nn.log_softmax(t / T, axis=1)
        dist = jnp.sum(jnp.exp(lt_t) * (lt_t - ls_t)) / B * (T * T)
    else:  # 'hard'
        idx = jnp.argmax(t, axis=1)
        dist = -jnp.mean(ls[jnp.arange(B), idx])
    return base * (1.0 - alpha) + dist * alpha


if __name__ == "__main__":
    # Small shapes consistent with the module's forward.
    B, C, H, W = 2, 4, 16, 16
    NC = 32                       # num_classes (small synthetic value)
    D = C * H * W
    alpha, tau = 0.5, 2.0

    key = jax.random.PRNGKey(0)
    k_in, k_out, k_lbl, k_w, k_b = jax.random.split(key, 5)
    inputs = jax.random.normal(k_in, (B, C, H, W), jnp.float32)
    outputs = jax.random.normal(k_out, (B, NC), jnp.float32)      # student logits
    labels = jax.random.randint(k_lbl, (B,), 0, NC, jnp.int32)
    # Deterministic synthetic teacher (linear classifier on flattened input).
    # TODO(synk): the real module wraps an arbitrary teacher_model; only a linear
    # teacher head is implemented in-kernel.
    teacher_w = jax.random.normal(k_w, (D, NC), jnp.float32) * 0.02
    teacher_b = jax.random.normal(k_b, (NC,), jnp.float32) * 0.01

    ok = True
    for dtype_ in ("none", "soft", "hard"):
        # tk=256 -> 4 K-steps: exercises the pipelined accumulation path.
        loss = distillation_loss(inputs, outputs, labels, teacher_w, teacher_b,
                                 distillation_type=dtype_, alpha=alpha, tau=tau,
                                 tk=256)
        loss = jax.block_until_ready(loss)
        ref = _reference(inputs, outputs, labels, teacher_w, teacher_b,
                         dtype_, alpha, tau)
        if not jnp.allclose(loss, ref, rtol=1e-4, atol=1e-4):
            ok = False
            print(f"MISMATCH ({dtype_}): kernel={float(loss)} ref={float(ref)}")

    if ok:
        print("KERNEL_OK")
</pallas_src>

<mosaic_0001>
module attributes {stable_mosaic.version = 11 : i64} {
  func.func @_ce_only_kernel(%arg0: i32, %arg1: memref<2x128xf32, #tpu.memory_space<vmem>>, %arg2: memref<2x1xi32, #tpu.memory_space<vmem>>, %arg3: memref<1x128xf32, #tpu.memory_space<vmem>>) attributes {dimension_semantics = [#tpu.dimension_semantics<arbitrary>], iteration_bounds = array<i64: 1>, scalar_prefetch = 0 : i64, scratch_operands = 0 : i64, tpu.core_type = #tpu.core_type<tc>, window_params = [{pipeline_mode = #tpu.pipeline_mode<synchronous>, transform_indices = @transform_0, window_bounds = array<i64: 2, 128>}, {pipeline_mode = #tpu.pipeline_mode<synchronous>, transform_indices = @transform_1, window_bounds = array<i64: 2, 1>}, {pipeline_mode = #tpu.pipeline_mode<synchronous>, transform_indices = @transform_2, window_bounds = array<i64: 1, 128>}]} {
    %c0 = arith.constant 0 : index
    %c0_0 = arith.constant 0 : index
    %0 = vector.load %arg1[%c0, %c0_0] : memref<2x128xf32, #tpu.memory_space<vmem>>, vector<2x128xf32>
    %cst = arith.constant dense<0xFF800000> : vector<2xf32>
    %1 = vector.multi_reduction <maximumf>, %0, %cst [1] : vector<2x128xf32> to vector<2xf32>
    %2 = vector.shape_cast %1 : vector<2xf32> to vector<2x1xf32>
    %3 = vector.broadcast %2 : vector<2x1xf32> to vector<2x128xf32>
    %4 = arith.subf %0, %3 : vector<2x128xf32>
    %5 = math.exp %4 : vector<2x128xf32>
    %cst_1 = arith.constant dense<0.000000e+00> : vector<2xf32>
    %6 = vector.multi_reduction <add>, %5, %cst_1 [1] : vector<2x128xf32> to vector<2xf32>
    %7 = vector.shape_cast %6 : vector<2xf32> to vector<2x1xf32>
    %8 = math.log %7 : vector<2x1xf32>
    %9 = vector.broadcast %8 : vector<2x1xf32> to vector<2x128xf32>
    %10 = arith.subf %4, %9 : vector<2x128xf32>
    %11 = tpu.iota {dimensions = array<i32: 1>} : vector<2x128xi32>
    %c0_2 = arith.constant 0 : index
    %c0_3 = arith.constant 0 : index
    %12 = vector.load %arg2[%c0_2, %c0_3] : memref<2x1xi32, #tpu.memory_space<vmem>>, vector<2x1xi32>
    %13 = vector.broadcast %12 : vector<2x1xi32> to vector<2x128xi32>
    %14 = arith.cmpi eq, %11, %13 : vector<2x128xi32>
    %15 = arith.extui %14 : vector<2x128xi1> to vector<2x128xi32>
    %16 = arith.sitofp %15 : vector<2x128xi32> to vector<2x128xf32>
    %17 = arith.mulf %16, %10 : vector<2x128xf32>
    %18 = vector.shape_cast %17 : vector<2x128xf32> to vector<1x2x128xf32>
    %cst_4 = arith.constant dense<0.000000e+00> : vector<1xf32>
    %19 = vector.multi_reduction <add>, %18, %cst_4 [1, 2] : vector<1x2x128xf32> to vector<1xf32>
    %20 = vector.shape_cast %19 : vector<1xf32> to vector<1x1x1xf32>
    %21 = vector.extract %20[0, 0, 0] : f32 from vector<1x1x1xf32>
    %22 = vector.broadcast %21 : f32 to vector<1x1xf32>
    %cst_5 = arith.constant 0.000000e+00 : f32
    %23 = vector.broadcast %cst_5 : f32 to vector<1x1xf32>
    %24 = arith.subf %23, %22 : vector<1x1xf32>
    %cst_6 = arith.constant 5.000000e-01 : f32
    %25 = vector.broadcast %cst_6 : f32 to vector<1x1xf32>
    %26 = arith.mulf %24, %25 : vector<1x1xf32>
    %27 = vector.shape_cast %26 : vector<1x1xf32> to vector<1x1xf32>
    %28 = vector.broadcast %27 : vector<1x1xf32> to vector<1x128xf32>
    %c0_7 = arith.constant 0 : index
    %c0_8 = arith.constant 0 : index
    %29 = vector.load %arg3[%c0_7, %c0_8] : memref<1x128xf32, #tpu.memory_space<vmem>>, vector<1x128xf32>
    tpu.vector_store %arg3[%c0_7, %c0_8], %28 {strides = array<i32>} : memref<1x128xf32, #tpu.memory_space<vmem>>, vector<1x128xf32>,
    return
  }
  func.func @transform_0(%arg0: i32) -> (i32, i32) {
    %c0_i32 = arith.constant 0 : i32
    %c0_i32_0 = arith.constant 0 : i32
    %c0_i32_1 = arith.constant 0 : i32
    return %c0_i32, %c0_i32_0 : i32, i32
  }
  func.func @transform_1(%arg0: i32) -> (i32, i32) {
    %c0_i32 = arith.constant 0 : i32
    %c0_i32_0 = arith.constant 0 : i32
    %c0_i32_1 = arith.constant 0 : i32
    return %c0_i32, %c0_i32_0 : i32, i32
  }
  func.func @transform_2(%arg0: i32) -> (i32, i32) {
    %c0_i32 = arith.constant 0 : i32
    %c0_i32_0 = arith.constant 0 : i32
    %c0_i32_1 = arith.constant 0 : i32
    return %c0_i32, %c0_i32_0 : i32, i32
  }
}

</mosaic_0001>

<bundles_post_ra>
// kernel: tpu_custom_call.1
= control target key start
LH: loop header
LB: loop body
LE: loop exit
PB: predicated region body
PF: predicated region fallthrough
CT: control target
= control target key end

     0   :  { %vm13_vm0 = vcmask 1041408   ;;  %s139_s0 = inlined_call_operand.vmem [shape: f32[2,128], index: 0, kind: input, shape index: {}]   ;;  %s140_s1 = inlined_call_operand.vmem [shape: s32[2,1], index: 1, kind: input, shape index: {}]   ;;  %s141_s2 = inlined_call_operand.hbm [shape: f32[1,128], index: 2, kind: output, shape index: {}]  }
   0x1   :  { %v12_v0 = vld [vmem:[%s139_s0] sm:$0x3] }
   0x2   :  { %7 = vsyncpa [#allocation3], 0  ;;  %v14_v1 = vsel %vm13_vm0, %v12_v0, -inf  ;;  %v28_v2 = vld [vmem:[%s140_s1] sm:$0x3]  ;;  %v100_v3 = vmov 0   ;;  %v26_v10 = vlaneseq }
   0x3   :  { %15 = vmax.xlane.f32.xlu0 %v14_v1  ;;  %70 = vset.pattern.permute.xlu1 %v100_v3  ;;  %v101_v15 = vmov 0.0   ;;  %s102_s1 = smov [#allocation2]  }
   0x4   :  { %71 = vset.pattern.permute.xlu0 %v100_v3  ;;  %30 = vperm.xlu1 %70, %v28_v2   ;;  %v27_v11 = vand.u32 127, %v26_v10  ;;  %s56_s13 = sshll.u32 %s102_s1, 4  ;;  %s57_s13 = int_to_ptr.vmem [resolvable:$true] %s56_s13 }
   0x5   :  { %s76_s14 = scalar_lea.vmem %s57_s13, 16  ;;  %s80_s15 = scalar_lea.vmem %s57_s13, 32 }
   0x6   :  { %p77_p0 = scmp.ne.s32.totalorder %s57_s13, %s76_s14  ;;  %p81_p1 = scmp.lt.s32.totalorder %s57_s13, %s57_s13 }
   0x7   :  { %p82_p2 = scmp.lt.s32.totalorder %s80_s15, %s76_s14 }
   0x9   :  { %p83_p3 = por %p82_p2, %p81_p1 }
   0xb   :  { %p84_p4 = pnand %p83_p3, %p77_p0 }
  0x83   :  { %v31_v12 = vpop.permute.xlu1 %30 }
  0x84   :  { %vm32_vm1 = vcmp.eq.s32.totalorder %v27_v11, %v31_v12 }
  0x85   :  { %v64_v16 = vsel %vm32_vm1, 1.0, %v101_v15 }
  0x90   :  { %v16_v4 = vpop.xlane.xlu0 %15 }
  0x91   :  { %v17_v5 = vsub.f32 %v12_v0, %v16_v4 }
  0x93   :  { %v18_v6 = vmul.f32 1.442695, %v17_v5 }
  0x95   :  { %72 = vpow2.f32 %v18_v6 }
  0x9f   :  { %v73_v7 = vpop.eup %72 }
  0xa0   :  { %v20_v8 = vsel %vm13_vm0, %v73_v7, 0.0 }
  0xa1   :  { %21 = vadd.xlane.f32.xlu0 %v20_v8 }
 0x12e   :  { %v22_v9 = vpop.xlane.xlu0 %21 }
 0x12f   :  { %74 = vlog2.f32 %v22_v9 }
 0x139   :  { %v75_v13 = vpop.eup %74 }
 0x13a   :  { %v24_v14 = vmul.f32 0.6931472, %v75_v13 }
 0x13c   :  { %v25_v17 = vsub.f32 %v17_v5, %v24_v14 }
 0x13e   :  { %v35_v18 = vmul.f32 %v64_v16, %v25_v17 }
 0x140   :  { %v36_v19 = vsel %vm13_vm0, %v35_v18, 0.0 }
 0x141   :  { %37 = vadd.xlane.f32.xlu1 %v36_v19 }
 0x1ce   :  { %v38_v20 = vpop.xlane.xlu1 %37 }
 0x1cf   :  { %v39_v21 = vrot.slane %v38_v20, 4 }
 0x1d1   :  { %v40_v22 = vadd.f32 %v39_v21, %v38_v20 }
 0x1d3   :  { %v41_v23 = vrot.slane %v40_v22, 2 }
 0x1d5   :  { %v42_v24 = vadd.f32 %v41_v23, %v40_v22 }
 0x1d7   :  { %v43_v25 = vrot.slane %v42_v24, 1 }
 0x1d9   :  { %v44_v26 = vadd.f32 %v43_v25, %v42_v24 }
 0x1db   :  { %65 = vpush %v44_v26 }
 0x20c   :  { %s66_s0 = spop %65 }
 0x20d   :  { %v46_v27 = vstv %s66_s0 }
 0x20e   :  { %v47_v28 = vsub.f32 0.0, %v46_v27 }
 0x210   :  { %v48_v29 = vmul.f32 0.5, %v47_v28 }
 0x212   :  { %49 = vst [vmem:[#allocation2] sm:$0x1] %v48_v29 }
 0x213   :  { %87 = shalt.err (!%p84_p4)
}
 0x214   :  { %s88_s18 = scalar_lea.hbm %s141_s2, 16 }
 0x215   :  { %p89_p5 = scmp.ne.s32.totalorder %s141_s2, %s88_s18  ;;  %p92_p6 = scmp.lt.u32.totalorder %s88_s18, %s141_s2 }
 0x217   :  { %p94_p7 = pnand %p92_p6, %p89_p5 }
 0x219   :  { %97 = shalt.err (!%p94_p7)
}
 0x21a   :  { %59 = dma.vmem_to_hbm [thread:$0]  %s57_s13, 16, %s141_s2, [#allocation3]  }
 0x21b   :  { %98 = dma.done.wait [#allocation3], 16  }
 0x21c   :  { %99 = vsyncadd [#allocation3], 4294967280 }
 0x21d   :  { %63 = vsyncpa [#allocation3], 1 }

</bundles_post_ra>
